<compile_context>
chip_gen: v7x
topology: tpu7x:2x2x1
jax: 0.10.0
libtpu: 0.0.40
codegen_flags: <defaults>
</compile_context>

<pallas_src>
import functools

import jax
import jax.numpy as jnp
from jax.experimental import pallas as pl
from jax.experimental.pallas import tpu as pltpu

LANE = 128
# Per-block byte budget (per buffer).  8 MiB keeps per-step overhead ~<2-7% of
# DMA time across v5e/v6e/v7x while fitting the VMEM budget below.
_BLOCK_BYTES = 8 * 1024 * 1024
# in + out, double-buffered: 4 x 8 MiB = 32 MiB live; request 48 MiB scoped
# VMEM (<= v7x 64 MiB physical, well under v5e/v6e 128 MiB).
_VMEM_LIMIT_BYTES = 48 * 1024 * 1024


def _sine_kernel(x_ref, o_ref, *, w0: float):
    # Upcast to f32 for the w0*x argument and the sin itself (phase accuracy);
    # only the result is downcast.  For f32 I/O the casts are no-ops.
    x = x_ref[...].astype(jnp.float32)
    o_ref[...] = jnp.sin(jnp.float32(w0) * x).astype(o_ref.dtype)
    # TODO(synk): if a v7x bundle dump shows the f32 sin polynomial saturating
    # the VALU slot, fold w0 into the range reduction / trim the polynomial.


def _sublane_multiple(itemsize: int) -> int:
    # Packed dtypes stack sublanes: 8 (4-byte) / 16 (2-byte) / 32 (1-byte).
    return {4: 8, 2: 16, 1: 32}.get(itemsize, 8)


def _pick_block_rows(rows: int, itemsize: int) -> int:
    """Dtype-aware block rows with >= 2 (even) grid steps when possible."""
    sub = _sublane_multiple(itemsize)
    if rows < 2 * sub:
        # Tiny input: a single full-extent block is always a legal block shape.
        return rows
    # Rows per block from the byte budget (multiple of the sublane packing).
    budget_rows = max(sub, (_BLOCK_BYTES // (itemsize * LANE)) // sub * sub)
    # Guarantee >= 2 grid steps (v7x megacore sharding + DMA/compute overlap),
    # preferring an even step count so both TensorCores get equal work.
    n_blocks = max(2, pl.cdiv(rows, budget_rows))
    if n_blocks % 2:
        n_blocks += 1
    block_rows = pl.cdiv(pl.cdiv(rows, n_blocks), sub) * sub
    return max(sub, block_rows)


def sine(x: jax.Array, w0: float = 30.0) -> jax.Array:
    orig_shape = x.shape
    orig_dtype = x.dtype
    n = x.size
    itemsize = jnp.dtype(orig_dtype).itemsize

    # Lane-dense slab.  Zero-copy reshape when numel % 128 == 0 (common NCHW
    # case).  Otherwise pad the flat tail to the next multiple of 128.
    # TODO(synk): the ragged-tail pad/slice adds extra HBM passes; could be
    # removed with memory_space=pl.ANY + manual masked DMA, kept simple here.
    if n % LANE == 0:
        slab = x.reshape(-1, LANE)
        padded = False
    else:
        n_pad = pl.cdiv(n, LANE) * LANE
        slab = jnp.pad(x.reshape(-1), (0, n_pad - n)).reshape(-1, LANE)
        padded = True

    rows = slab.shape[0]
    block_rows = _pick_block_rows(rows, itemsize)
    grid = (pl.cdiv(rows, block_rows),)

    out = pl.pallas_call(
        functools.partial(_sine_kernel, w0=float(w0)),
        out_shape=jax.ShapeDtypeStruct((rows, LANE), orig_dtype),
        grid_spec=pl.GridSpec(
            grid=grid,
            in_specs=[pl.BlockSpec((block_rows, LANE), lambda i: (i, 0))],
            out_specs=pl.BlockSpec((block_rows, LANE), lambda i: (i, 0)),
        ),
        compiler_params=pltpu.CompilerParams(
            # Elementwise -> row blocks shard cleanly across TensorCores.
            dimension_semantics=("parallel",),
            vmem_limit_bytes=_VMEM_LIMIT_BYTES,
        ),
        cost_estimate=pl.CostEstimate(
            flops=rows * LANE,
            transcendentals=rows * LANE,
            bytes_accessed=2 * rows * LANE * itemsize,
        ),
    )(slab)

    if padded:
        return out.reshape(-1)[:n].reshape(orig_shape)
    return out.reshape(orig_shape)


if __name__ == "__main__":
    key = jax.random.PRNGKey(0)

    # Typical NCHW activation tensor (numel % 128 == 0 -> zero-copy slab path;
    # 16 rows -> two (8, 128) blocks, exercising the >=2-step grid).
    x = jax.random.normal(key, (2, 4, 16, 16), dtype=jnp.float32)
    y = jax.block_until_ready(sine(x, w0=30.0))
    y_ref = jnp.sin(30.0 * x)
    assert y.shape == x.shape and y.dtype == x.dtype
    assert jnp.max(jnp.abs(y - y_ref)) < 1e-5

    # Odd-sized input exercises the ragged-tail fallback path.
    x2 = jax.random.normal(jax.random.PRNGKey(1), (3, 5, 7), dtype=jnp.float32)
    y2 = jax.block_until_ready(sine(x2, w0=30.0))
    y2_ref = jnp.sin(30.0 * x2)
    assert y2.shape == x2.shape and y2.dtype == x2.dtype
    assert jnp.max(jnp.abs(y2 - y2_ref)) < 1e-5

    # bf16 I/O: argument/sin computed in f32 inside the kernel, output downcast.
    x3 = jax.random.normal(jax.random.PRNGKey(2), (2, 4, 16, 16), dtype=jnp.bfloat16)
    y3 = jax.block_until_ready(sine(x3, w0=30.0))
    y3_ref = jnp.sin(30.0 * x3.astype(jnp.float32)).astype(jnp.bfloat16)
    assert y3.shape == x3.shape and y3.dtype == x3.dtype
    assert jnp.max(jnp.abs(y3.astype(jnp.float32) - y3_ref.astype(jnp.float32))) < 1e-2

    print("KERNEL_OK")
</pallas_src>

<mosaic_0001>
module attributes {stable_mosaic.version = 11 : i64} {
  func.func @_sine_kernel(%arg0: i32, %arg1: memref<8x128xf32, #tpu.memory_space<vmem>>, %arg2: memref<8x128xf32, #tpu.memory_space<vmem>>) attributes {dimension_semantics = [#tpu.dimension_semantics<parallel>], iteration_bounds = array<i64: 2>, scalar_prefetch = 0 : i64, scratch_operands = 0 : i64, tpu.core_type = #tpu.core_type<tc>, window_params = [{transform_indices = @transform_0, window_bounds = array<i64: 8, 128>}, {transform_indices = @transform_1, window_bounds = array<i64: 8, 128>}]} {
    %c0 = arith.constant 0 : index
    %c0_0 = arith.constant 0 : index
    %0 = vector.load %arg1[%c0, %c0_0] : memref<8x128xf32, #tpu.memory_space<vmem>>, vector<8x128xf32>
    %cst = arith.constant 3.000000e+01 : f32
    %1 = vector.broadcast %cst : f32 to vector<8x128xf32>
    %2 = arith.mulf %1, %0 : vector<8x128xf32>
    %3 = math.sin %2 : vector<8x128xf32>
    %c0_1 = arith.constant 0 : index
    %c0_2 = arith.constant 0 : index
    %4 = vector.load %arg2[%c0_1, %c0_2] : memref<8x128xf32, #tpu.memory_space<vmem>>, vector<8x128xf32>
    tpu.vector_store %arg2[%c0_1, %c0_2], %3 {strides = array<i32>} : memref<8x128xf32, #tpu.memory_space<vmem>>, vector<8x128xf32>,
    return
  }
  func.func @transform_0(%arg0: i32) -> (i32, i32) {
    %c0_i32 = arith.constant 0 : i32
    %c0_i32_0 = arith.constant 0 : i32
    return %arg0, %c0_i32 : i32, i32
  }
  func.func @transform_1(%arg0: i32) -> (i32, i32) {
    %c0_i32 = arith.constant 0 : i32
    %c0_i32_0 = arith.constant 0 : i32
    return %arg0, %c0_i32 : i32, i32
  }
}

</mosaic_0001>

<bundles_post_ra>
// kernel: tpu_custom_call.1
= control target key start
LH: loop header
LB: loop body
LE: loop exit
PB: predicated region body
PF: predicated region fallthrough
CT: control target
= control target key end

     0   :  { %6 = vsyncpa [#allocation3], 0  ;;  %s701_s0 = inlined_call_operand.hbm [shape: f32[16,128], index: 0, kind: input, shape index: {}]   ;;  %s702_s1 = inlined_call_operand.hbm [shape: f32[16,128], index: 1, kind: output, shape index: {}]  }
   0x1   :  { %8 = vsyncpa [#allocation3 + $0x1], 0 }
   0x2   :  { %9 = vsyncpa [#allocation4], 0 }
   0x3   :  { %11 = vsyncpa [#allocation4 + $0x1], 0  ;;  %s515_s6 = smov 0   ;;  %s517_s7 = smov 0  }
   0x4   :  { %s519_s8 = smov 0   ;;  %s521_s9 = smov 0  }
   0x5 LB: > { %s536_s10 = sadd.s32 4294967295, %s495_s9   ;;  %s323_s11 = sadd.s32 4294967294, %s495_s9   ;;  %s495_s9 = sphi %s521_s9, %s717_s9   ;;  %s491_s8 = sphi %s519_s8, %s716_s8   ;;  %s487_s7 = sphi %s517_s7, %s715_s7   ;;  %s483_s6 = sphi %s515_s6, %s714_s6  }
   0x6   : > { %s540_s12 = sadd.s32 1, %s495_s9   ;;  %s24_s13 = sadd.s32 1, %s491_s8 }
   0x7   : > { %s21_s14 = ssub.s32 %s495_s9, %s540_s12  ;;  %p31_p0 = scmp.ne.s32.totalorder %s491_s8, %s487_s7 }
   0x8   : > { %p22_p1 = scmp.eq.s32.totalorder %s21_s14, 0  ;;  %p32_p2 = scmp.eq.s32.totalorder %s495_s9, 0 }
   0x9   : > { %p37_p3 = scmp.ne.s32.totalorder %s487_s7, %s483_s6  ;;  %p38_p4 = scmp.eq.s32.totalorder %s536_s10, 0 }
   0xa   : > { %s552_s15 = scalar_select %p22_p1, %s491_s8, %s24_s13  }
   0xb   : > { %p554_p5 = por %p32_p2, %p31_p0  ;;  %p558_p6 = por %p38_p4, %p37_p3 }
   0xc   : > { %p61_p7 = scmp.eq.s32.totalorder %s536_s10, 1  ;;  %p67_p8 = scmp.eq.s32.totalorder %s323_s11, 1 }
   0xd   : > { %p355_p10 = scmp.lt.s32.totalorder %s495_s9, 2  ;;  %s87_s20 = sand.u32 1, %s491_s8  }
   0xe   : > { %p565_p11 = por %p61_p7, %p31_p0  ;;  %p569_p12 = por %p67_p8, %p37_p3 }
   0xf   : > { %s327_s21 = sshll.u32 %s495_s9, 7  ;;  %s326_s22 = sshll.u32 %s87_s20, 3 }
  0x10   : > { %s706_s18 = scalar_select %p565_p11, 1, 0 }
  0x11   : > { %s707_s19 = scalar_select %p569_p12, 1, 0 }
  0x12   : > { %s578_s25 = scalar_lea.hbm %s701_s0, %s327_s21  ;;  %s91_s26 = scalar_lea.vmem [#allocation2], %s326_s22 }
  0x13   : > { %s98_s27 = sshll.u32 %s91_s26, 4  ;;  %p582_p13 = pnand %p355_p10, %p554_p5  ;;  %s586_s27 = int_to_ptr.vmem [resolvable:$true] %s98_s27 }
  0x14   : > { %s88_s29 = scalar_lea.sflag [#allocation3], %s87_s20  ;;  %s399_s30 = scalar_lea.hbm %s578_s25, 128 }
  0x15   : > { %p400_p2 = scmp.ne.s32.totalorder %s578_s25, %s399_s30  ;;  %p401_p3 = pneg %p582_p13 }
  0x16   : > { %s404_s4 = scalar_lea.hbm %s701_s0, 256  ;;  %p405_p5 = scmp.lt.u32.totalorder %s578_s25, %s701_s0 }
  0x17   : > { %p402_p4 = pnand %p401_p3, %p400_p2  ;;  %p406_p8 = scmp.lt.u32.totalorder %s404_s4, %s399_s30 }
  0x18   : > { %p408_p9 = scmp.lt.u32.totalorder %s399_s30, %s578_s25 }
  0x19   : > { %p403_p7 = pneg %p402_p4  ;;  %p407_p10 = por %p406_p8, %p405_p5 }
  0x1b   : > { %p409_p0 = por %p408_p9, %p407_p10 }
  0x1d   : > { %p410_p1 = pnand %p409_p0, %p403_p7 }
  0x1f   : > { %413 = shalt.err (!%p410_p1)
}
  0x20   : > { %s414_s13 = scalar_lea.vmem %s586_s27, 128  ;;  %s497_s14 = smov [#allocation2]  }
  0x21   : > { %p415_p2 = scmp.ne.s32.totalorder %s586_s27, %s414_s13  ;;  %s419_s16 = sshll.u32 %s497_s14, 4  ;;  %s420_s16 = int_to_ptr.vmem [resolvable:$false] %s419_s16 }
  0x22   : > { %s421_s20 = scalar_lea.vmem %s420_s16, 256  ;;  %p422_p11 = scmp.lt.s32.totalorder %s586_s27, %s420_s16 }
  0x23   : > { %p417_p4 = pnand %p415_p2, %p401_p3  ;;  %p423_p5 = scmp.lt.s32.totalorder %s421_s20, %s414_s13 }
  0x25   : > { %p418_p12 = pneg %p417_p4  ;;  %p424_p8 = por %p423_p5, %p422_p11 }
  0x27   : > { %p425_p9 = pnand %p424_p8, %p418_p12 }
  0x29   : > { %428 = shalt.err (!%p425_p9)
}
  0x2a   : > { %350 = dma.hbm_to_vmem [thread:$0]  (!%p582_p13), %s578_s25, 128, %s586_s27, %s88_s29  }
  0x2b   : > { %p709_p0 = scmp.lt.s32.totalorder %s495_s9, 3  ;;  %p710_p1 = scmp.ge.s32.totalorder %s495_s9, 1 }
  0x2d   : > { %p104_p3 = pnand %p710_p1, %p709_p0 }
  0x2e   : > { %s620_s21 = sand.u32 (!%p104_p3), 1, %s487_s7  }
  0x2f   : > { %107 = sbr.rel (%p104_p3) target bundleno = 152 (0x98), region = 24  ;;  %s329_s22 = sshll.u32 (!%p104_p3), %s620_s21, 3 }
  0x30   : > { %s110_s23 = scalar_lea.sflag (!%p104_p3), [#allocation3], %s620_s21  ;;  %s113_s24 = scalar_lea.vmem (!%p104_p3), [#allocation2], %s329_s22 }
  0x36   : > { %474 = dma.done.wait (%p558_p6), %s110_s23, 128  }
  0x37   : > { %476 = vsyncadd (%p558_p6), %s110_s23, 4294967168  ;;  %v132_v0 = vld [vmem:[%s113_s24] sm:$0xff]  ;;  %v498_v13 = vmov 683565275   ;;  %v499_v15 = vmov 2475754826  }
  0x38   : > { %v630_v1 = vmul.f32 30.0, %v132_v0  ;;  %v500_v17 = vmov 2131351028   ;;  %v501_v19 = vmov 2102212464   ;;  %s131_s17 = scalar_lea.vmem [#allocation5], %s329_s22 }
  0x39   : > { %v502_v21 = vmov 920167782   ;;  %v503_v28 = vmov 1326507024   ;;  %s253_s25 = sshll.u32 %s131_s17, 4  ;;  %s336_s26 = sshll.u32 %s536_s10, 7  ;;  %s654_s25 = int_to_ptr.vmem [resolvable:$true] %s253_s25 }
  0x3a   : > { %v137_v2 = vand.u32 2139095040, %v630_v1  ;;  %v134_v4 = vand.u32 2147483647, %v630_v1  ;;  %vm136_vm7 = vcmp.lt.s32.totalorder %v630_v1, 0  ;;  %vm226_vm12 = vweird.f32 %v630_v1  ;;  %s659_s29 = scalar_lea.hbm %s702_s1, %s336_s26  ;;  %s240_s30 = scalar_lea.sflag [#allocation4], %s620_s21 }
  0x3b   : > { %s429_s2 = scalar_lea.vmem %s654_s25, 128  ;;  %p711_p11 = scmp.ne.s32.totalorder %s706_s18, 0 }
  0x3c   : > { %v138_v3 = vshrl.u32 %v137_v2, 23  ;;  %v141_v7 = vand.u32 8388607, %v134_v4  ;;  %vm135_vm8 = vcmp.le.f32.partialorder %v134_v4, 0.7853982  ;;  %p430_p6 = scmp.ne.s32.totalorder %s654_s25, %s429_s2  ;;  %s504_s10 = smov [#allocation5]  }
  0x3d   : > { %s433_s3 = sshll.u32 %s504_s10, 4  ;;  %s434_s3 = int_to_ptr.vmem [resolvable:$false] %s433_s3 }
  0x3e   : > { %v331_v5 = vadd.s32 4294967169, %v138_v3  ;;  %v142_v10 = vor.u32 8388608, %v141_v7  ;;  %p431_p12 = pnand %p430_p6, %p711_p11  ;;  %s435_s4 = scalar_lea.vmem %s434_s3, 256 }
  0x3f   : > { %p436_p7 = scmp.lt.s32.totalorder %s654_s25, %s434_s3  ;;  %p437_p10 = scmp.lt.s32.totalorder %s435_s4, %s429_s2 }
  0x40   : > { %v144_v6 = vadd.s32 1, %v331_v5  ;;  %v182_v30 = vshll.u32 %v142_v10, 8  ;;  %p432_p13 = pneg %p431_p12 }
  0x41   : > { %p438_p2 = por %p437_p10, %p436_p7 }
  0x42   : > { %vm145_vm0 = vcmp.gt.s32.totalorder %v144_v6, 0 }
  0x43   : > { %v146_v8 = vsel %vm145_vm0, %v144_v6, 0  ;;  %p439_p4 = pnand %p438_p2, %p432_p13 }
  0x44   : > { %v148_v9 = vand.u32 31, %v146_v8  ;;  %v147_v11 = vshrl.u32 %v146_v8, 5 }
  0x46   : > { %v149_v12 = vsub.s32 32, %v148_v9  ;;  %v151_v14 = vshll.u32 %v498_v13, %v148_v9  ;;  %v154_v16 = vshll.u32 %v499_v15, %v148_v9  ;;  %v157_v18 = vshll.u32 %v500_v17, %v148_v9 }
  0x47   : > { %v160_v20 = vshll.u32 %v501_v19, %v148_v9  ;;  %v163_v22 = vshll.u32 %v502_v21, %v148_v9  ;;  %vm166_vm1 = vcmp.lt.s32.totalorder %v147_v11, 1  ;;  %vm169_vm2 = vcmp.lt.s32.totalorder %v147_v11, 4 }
  0x48   : > { %v150_v23 = vshrl.u32 %v498_v13, %v149_v12  ;;  %v152_v24 = vshrl.u32 %v499_v15, %v149_v12  ;;  %v155_v25 = vshrl.u32 %v500_v17, %v149_v12  ;;  %v158_v26 = vshrl.u32 %v501_v19, %v149_v12 }
  0x49   : > { %v161_v27 = vshrl.u32 %v502_v21, %v149_v12  ;;  %v164_v29 = vshrl.u32 %v503_v28, %v149_v12  ;;  %vm167_vm3 = vcmp.lt.s32.totalorder %v147_v11, 2  ;;  %vm168_vm4 = vcmp.lt.s32.totalorder %v147_v11, 3 }
  0x4a   : > { %v153_v31 = vor.u32 %v152_v24, %v151_v14  ;;  %v156_v32 = vor.u32 %v155_v25, %v154_v16  ;;  %v159_v33 = vor.u32 %v158_v26, %v157_v18 }
  0x4b   : > { %v162_v34 = vor.u32 %v161_v27, %v160_v20  ;;  %v165_v35 = vor.u32 %v164_v29, %v163_v22 }
  0x4c   : > { %v170_v36 = vsel %vm166_vm1, %v150_v23, %v153_v31  ;;  %v171_v37 = vsel %vm169_vm2, %v159_v33, 2102212464  ;;  %v174_v38 = vsel %vm166_vm1, %v153_v31, %v156_v32  ;;  %v178_v39 = vsel %vm166_vm1, %v156_v32, %v159_v33 }
  0x4d   : > { %v172_v40 = vsel %vm168_vm4, %v156_v32, %v171_v37  ;;  %v175_v41 = vsel %vm169_vm2, %v162_v34, 920167782  ;;  %v179_v42 = vsel %vm169_vm2, %v165_v35, 1326507024 }
  0x4e   : > { %v176_v43 = vsel %vm168_vm4, %v159_v33, %v175_v41  ;;  %v180_v44 = vsel %vm168_vm4, %v162_v34, %v179_v42  ;;  %v173_v45 = vsel %vm167_vm3, %v170_v36, %v172_v40 }
  0x4f   : > { %v177_v46 = vsel %vm167_vm3, %v174_v38, %v176_v43  ;;  %v181_v47 = vsel %vm167_vm3, %v178_v39, %v180_v44  ;;  %v189_v52 = vmul.u32 %v182_v30, %v173_v45 }
  0x50   : > { %v636_v48 = vmul.u32.u64.low %v182_v30, %v181_v47  ;;  %v637_v49 = vmul.u32.u64.high %v182_v30, %v181_v47, %v636_v48  ;;  %v639_v50 = vmul.u32.u64.low %v182_v30, %v177_v46  ;;  %v640_v51 = vmul.u32.u64.high %v182_v30, %v177_v46, %v639_v50 }
  0x52   : > { %vm191_vm5 = vc.u32 %v637_v49, %v639_v50  ;;  %v192_v53 = vadd.s32 1, %v640_v51  ;;  %v190_v0 = vadd.s32 %v639_v50, %v637_v49 }
  0x54   : > { %v193_v54 = vsel %vm191_vm5, %v192_v53, %v640_v51 }
  0x55   : > { %v194_v55 = vadd.s32 %v193_v54, %v189_v52 }
  0x57   : > { %v195_v56 = vadd.s32 536870912, %v194_v55 }
  0x59   : > { %v196_v57 = vshrl.u32 %v195_v56, 30 }
  0x5b   : > { %v197_v58 = vshll.u32 %v196_v57, 30  ;;  %v220_v14 = vsub.s32 4, %v196_v57 }
  0x5d   : > { %v198_v59 = vsub.s32 %v194_v55, %v197_v58  ;;  %v221_v17 = vsel %vm136_vm7, %v220_v14, %v196_v57 }
  0x5e   : > { %v223_v20 = vsel %vm135_vm8, 0, %v221_v17 }
  0x5f   : > { %v200_v60 = vsub.s32 0, %v198_v59  ;;  %v227_v21 = vadd.s32 3, %v223_v20 }
  0x61   : > { %v332_v61 = vmin.u32 %v200_v60, %v198_v59  ;;  %v228_v22 = vand.u32 3, %v227_v21 }
  0x63   : > { %v202_v62 = vclz %v332_v61  ;;  %vm233_vm9 = vcmp.eq.s32.totalorder %v228_v22, 2  ;;  %vm230_vm10 = vcmp.eq.s32.totalorder %v228_v22, 0  ;;  %vm229_vm11 = vcmp.lt.s32.totalorder %v228_v22, 2 }
  0x65   : > { %v333_v63 = vadd.s32 4294967294, %v202_v62 }
  0x67   : > { %vm334_vm6 = vcmp.lt.s32.totalorder %v333_v63, 0 }
  0x68   : > { %v205_v2 = vsel %vm334_vm6, 0, %v333_v63 }
  0x69   : > { %v206_v3 = vsub.s32 32, %v205_v2  ;;  %v207_v5 = vshll.u32 %v198_v59, %v205_v2  ;;  %v210_v6 = vsub.s32 4294967266, %v205_v2 }
  0x6b   : > { %v208_v7 = vshrl.u32 %v190_v0, %v206_v3  ;;  %v211_v8 = vadd.s32 127, %v210_v6 }
  0x6d   : > { %v209_v9 = vor.u32 %v208_v7, %v207_v5  ;;  %v212_v10 = vshll.u32 %v211_v8, 23 }
  0x6f   : > { %v213_v11 = vor.u32 4788187, %v212_v10  ;;  %v216_v12 = vcvt.s32.f32 %v209_v9 }
  0x71   : > { %v214_v13 = vand.u32 2147483647, %v213_v11 }
  0x73   : > { %v217_v15 = vmul.f32 %v216_v12, %v214_v13 }
  0x75   : > { %v218_v16 = vxor.u32 2147483648, %v217_v15 }
  0x77   : > { %v219_v18 = vsel %vm136_vm7, %v218_v16, %v217_v15 }
  0x78   : > { %v222_v19 = vsel %vm135_vm8, %v630_v1, %v219_v18 }
  0x79   : > { %395 = vcosq.f32 %v222_v19 }
  0x7a   : > { %397 = vsinq.f32 %v222_v19 }
  0x83   : > { %v396_v23 = vpop.eup %395 }
  0x84   : > { %v398_v24 = vpop.eup %397  ;;  %v234_v25 = vxor.u32 2147483648, %v396_v23 }
  0x85   : > { %v231_v4 = vxor.u32 2147483648, %v398_v24 }
  0x86   : > { %v235_v26 = vsel %vm233_vm9, %v234_v25, %v398_v24 }
  0x87   : > { %v232_v27 = vsel %vm230_vm10, %v396_v23, %v231_v4 }
  0x88   : > { %v236_v28 = vsel %vm229_vm11, %v232_v27, %v235_v26 }
  0x89   : > { %v237_v29 = vsel %vm226_vm12, nan, %v236_v28 }
  0x8a   : > { %238 = vst [vmem:[%s131_s17] sm:$0xff] %v237_v29 }
  0x8b   : > { %442 = shalt.err (!%p439_p4)
}
  0x8c   : > { %s443_s5 = scalar_lea.hbm %s659_s29, 128  ;;  %s447_s14 = scalar_lea.hbm %s702_s1, 256 }
  0x8d   : > { %p444_p5 = scmp.ne.s32.totalorder %s659_s29, %s443_s5  ;;  %p448_p0 = scmp.lt.u32.totalorder %s659_s29, %s702_s1 }
  0x8e   : > { %p449_p1 = scmp.lt.u32.totalorder %s447_s14, %s443_s5  ;;  %p451_p6 = scmp.lt.u32.totalorder %s443_s5, %s659_s29 }
  0x8f   : > { %p445_p8 = pnand %p444_p5, %p711_p11 }
  0x90   : > { %p450_p3 = por %p449_p1, %p448_p0 }
  0x91   : > { %p446_p9 = pneg %p445_p8 }
  0x92   : > { %p452_p12 = por %p451_p6, %p450_p3 }
  0x94   : > { %p453_p13 = pnand %p452_p12, %p446_p9 }
  0x96   : > { %456 = shalt.err (!%p453_p13)
}
  0x97   : > { %345 = dma.vmem_to_hbm [thread:$0]  (%p711_p11), %s654_s25, 128, %s659_s29, %s240_s30  }
  0x98 PF: > { %s265_s21 = sand.u32 1, %s483_s6   ;;  %p712_p7 = scmp.ne.s32.totalorder %s707_s19, 0 }
  0x99   : > { %p713_p10 = scmp.ge.s32.totalorder %s495_s9, 2  ;;  %s266_s22 = scalar_lea.sflag [#allocation4], %s265_s21 }
  0x9b   : > { %p352_p2 = pnand %p713_p10, %p712_p7 }
  0x9d   : > { %478 = dma.done.wait (!%p352_p2), %s266_s22, 128  }
  0x9e   : > { %480 = vsyncadd (!%p352_p2), %s266_s22, 4294967168  ;;  %p14_p4 = scmp.ge.s32.totalorder %s540_s12, 4   ;;  %s714_s6 = smov %s487_s7 }
  0x9f   : > { %s715_s7 = smov %s491_s8  ;;  %s716_s8 = smov %s552_s15 }
  0xa0   : > { %s717_s9 = smov %s540_s12  ;;  %16 = sbr.rel (!%p14_p4) target bundleno = 5 (0x5), region = 69 }
  0xa7   :  { %271 = vsyncpa [#allocation3], 1 }
  0xa8   :  { %273 = vsyncpa [#allocation3 + $0x1], 1 }
  0xa9   :  { %274 = vsyncpa [#allocation4], 1 }
  0xaa   :  { %276 = vsyncpa [#allocation4 + $0x1], 1 }

</bundles_post_ra>
